<compile_context>
chip_gen: v6e
topology: v6e:2x2x1
jax: 0.10.0
libtpu: 0.0.40
codegen_flags: <defaults>
</compile_context>

<pallas_src>
import functools

import jax
import jax.numpy as jnp
from jax.experimental import pallas as pl
from jax.experimental.pallas import tpu as pltpu


# Per-block byte cap for the two-phase (tiled) path.
_MAX_BLOCK_BYTES = 4 * 1024 * 1024
# Cap on the (c_tile, HW) f32 working value inside the fused kernel.
_MAX_FUSED_VALUE_BYTES = 2 * 1024 * 1024


def _vmem_limit_bytes():
    """Explicit scoped-VMEM limit, safe on v5e/v6e (128 MiB) and v7x (64 MiB)."""
    cap = 64 * 1024 * 1024
    try:
        cap = int(getattr(pltpu.get_tpu_info(), "vmem_capacity_bytes", cap)) or cap
    except Exception:
        pass
    return int(min(cap * 3 // 4, 48 * 1024 * 1024))


def _sublane_pack(itemsize):
    return {4: 8, 2: 16, 1: 32}.get(itemsize, 8)


def _choose_fused_c_tile(N, C, HW, itemsize, vmem_limit):
    """Largest channel tile whose full (N, c_tile, HW) slab fits VMEM (fused path)."""
    sublane = _sublane_pack(itemsize)
    budget = vmem_limit - 8 * 1024 * 1024  # headroom: per-channel blocks, compiler scratch
    if budget <= 0:
        return None

    def ok(c):
        slab = 4 * N * c * HW * itemsize          # x + y, double-buffered
        value = c * HW * 4                        # per-batch-element f32 working value
        return slab <= budget and value <= _MAX_FUSED_VALUE_BYTES

    cands = [c for c in range(C, 0, -1)
             if C % c == 0 and (c % sublane == 0 or c == C) and ok(c)]
    if not cands:
        return None
    # Prefer >=2 channel blocks so the parallel grid axis can shard across the
    # two TensorCores on v7x; harmless on v5e/v6e.
    half = [c for c in cands if c <= C // 2]
    return half[0] if half else cands[0]


def _choose_tiles(C, HW, itemsize):
    """(c_tile, hw_tile) for the two-phase path."""
    sublane = _sublane_pack(itemsize)
    hw_tile = None
    for cand in (4096, 2048, 1024, 512, 256, 128):
        if HW % cand == 0:
            hw_tile = cand
            break
    if hw_tile is None:
        # TODO(synk): zero-pad HW to a multiple of 128 (stats-neutral) for fully
        # lane-dense stores; full-dim fallback is correct but uses masked vst.
        hw_tile = HW
    c_cands = [c for c in range(C, 0, -1)
               if C % c == 0 and c % sublane == 0
               and c * hw_tile * itemsize <= _MAX_BLOCK_BYTES]
    c_half = [c for c in c_cands if c <= C // 2]   # v7x megacore: >=2 channel blocks
    if c_half:
        c_tile = c_half[0]
    elif c_cands:
        c_tile = c_cands[0]
    else:
        c_tile = C  # full-dim exception to the (8,128) rule
        if C * hw_tile * itemsize > _MAX_BLOCK_BYTES and hw_tile % 128 == 0:
            for cand in (2048, 1024, 512, 256, 128):
                if hw_tile % cand == 0 and C * cand * itemsize <= _MAX_BLOCK_BYTES:
                    hw_tile = cand
                    break
    return c_tile, hw_tile


# ---------------------------------------------------------------------------
# Fused fast path: grid over channel tiles, whole (N, c_tile, HW) slab resident.
# ---------------------------------------------------------------------------
def _bn_fused_kernel(x_ref, w_ref, b_ref, y_ref, mean_ref, var_ref, *,
                     inv_count, eps, compute_dtype):
    n_batch = x_ref.shape[0]
    c_tile = x_ref.shape[1]

    # Pass 1: per-channel sum -> mean (x is VMEM-resident, extra passes are cheap).
    def sum_body(n, acc):
        xn = x_ref[n].astype(jnp.float32)                      # (c_tile, HW)
        return acc + jnp.sum(xn, axis=-1, keepdims=True)

    total = jax.lax.fori_loop(0, n_batch, sum_body,
                              jnp.zeros((c_tile, 1), jnp.float32))
    mean = total * inv_count

    # Pass 2: centered second moment -> numerically robust biased variance.
    def var_body(n, acc):
        d = x_ref[n].astype(jnp.float32) - mean
        return acc + jnp.sum(d * d, axis=-1, keepdims=True)

    sq = jax.lax.fori_loop(0, n_batch, var_body,
                           jnp.zeros((c_tile, 1), jnp.float32))
    var = sq * inv_count

    mean_ref[...] = mean
    var_ref[...] = var

    # Pass 3: y = x * scale + shift from the same VMEM-resident copy of x.
    inv_std = jax.lax.rsqrt(var + eps)                         # EUP
    scale_f32 = w_ref[...] * inv_std
    shift_f32 = b_ref[...] - mean * scale_f32
    scale = scale_f32.astype(compute_dtype)
    shift = shift_f32.astype(compute_dtype)

    def apply_body(n, carry):
        xn = x_ref[n].astype(compute_dtype)
        y_ref[n] = (xn * scale + shift).astype(y_ref.dtype)
        return carry

    jax.lax.fori_loop(0, n_batch, apply_body, 0)


def _fused_train(x3, weight, bias, c_tile, vmem_limit, eps, compute_dtype):
    N, C, HW = x3.shape
    num_c = C // c_tile
    w2 = weight.reshape(C, 1).astype(jnp.float32)
    b2 = bias.reshape(C, 1).astype(jnp.float32)
    y3, mean2, var2 = pl.pallas_call(
        functools.partial(_bn_fused_kernel, inv_count=1.0 / (N * HW), eps=eps,
                          compute_dtype=compute_dtype),
        out_shape=(jax.ShapeDtypeStruct((N, C, HW), x3.dtype),
                   jax.ShapeDtypeStruct((C, 1), jnp.float32),
                   jax.ShapeDtypeStruct((C, 1), jnp.float32)),
        grid=(num_c,),
        in_specs=[pl.BlockSpec((N, c_tile, HW), lambda ci: (0, ci, 0)),
                  pl.BlockSpec((c_tile, 1), lambda ci: (ci, 0)),
                  pl.BlockSpec((c_tile, 1), lambda ci: (ci, 0))],
        out_specs=(pl.BlockSpec((N, c_tile, HW), lambda ci: (0, ci, 0)),
                   pl.BlockSpec((c_tile, 1), lambda ci: (ci, 0)),
                   pl.BlockSpec((c_tile, 1), lambda ci: (ci, 0))),
        compiler_params=pltpu.CompilerParams(
            dimension_semantics=("parallel",),
            vmem_limit_bytes=vmem_limit),
    )(x3, w2, b2)
    return y3, mean2.reshape(C), var2.reshape(C)


# ---------------------------------------------------------------------------
# Two-phase fallback: tiled stats kernel + tiled apply kernel.
# ---------------------------------------------------------------------------
def _bn_stats_kernel(x_ref, mean_ref, var_ref, sum_sc, sumsq_sc, *, inv_count):
    # grid = (C_tiles, N, HW_tiles); x_ref block = (c_tile, hw_tile)
    ni = pl.program_id(1)
    hi = pl.program_id(2)

    @pl.when((ni == 0) & (hi == 0))
    def _():
        sum_sc[...] = jnp.zeros_like(sum_sc)
        sumsq_sc[...] = jnp.zeros_like(sumsq_sc)

    x = x_ref[...].astype(jnp.float32)                         # (c_tile, hw_tile)
    hw_tile = x.shape[-1]
    lanes = sum_sc.shape[-1]
    if lanes > 1 and hw_tile % lanes == 0:
        # Lane-parallel partial sums (pure VPU adds); 128->1 XLU reduce deferred
        # to the finalize branch.
        s = x[:, :lanes]
        q = s * s
        for off in range(lanes, hw_tile, lanes):
            c = x[:, off:off + lanes]
            s = s + c
            q = q + c * c
        sum_sc[...] += s
        sumsq_sc[...] += q
    else:
        sum_sc[...] += jnp.sum(x, axis=-1, keepdims=True)
        sumsq_sc[...] += jnp.sum(x * x, axis=-1, keepdims=True)

    @pl.when((ni == pl.num_programs(1) - 1) & (hi == pl.num_programs(2) - 1))
    def _():
        total = jnp.sum(sum_sc[...], axis=-1, keepdims=True)
        total_sq = jnp.sum(sumsq_sc[...], axis=-1, keepdims=True)
        mean = total * inv_count
        # Single-pass variance; clamped.  (Fused path uses a centered variance.)
        var = jnp.maximum(total_sq * inv_count - mean * mean, 0.0)
        mean_ref[...] = mean
        var_ref[...] = var


def _bn_apply_kernel(x_ref, mean_ref, var_ref, w_ref, b_ref, y_ref, *,
                     eps, compute_dtype):
    # Per-channel scale/shift folded into the kernel (rsqrt on the EUP slot).
    inv_std = jax.lax.rsqrt(var_ref[...] + eps)                # (c_tile, 1)
    scale_f32 = w_ref[...] * inv_std
    shift_f32 = b_ref[...] - mean_ref[...] * scale_f32
    scale = scale_f32.astype(compute_dtype)
    shift = shift_f32.astype(compute_dtype)
    x = x_ref[...].astype(compute_dtype)                       # (c_tile, hw_tile)
    y_ref[...] = (x * scale + shift).astype(y_ref.dtype)


def _batch_stats(x3, c_tile, hw_tile, vmem_limit):
    N, C, HW = x3.shape
    num_c = C // c_tile
    num_hw = HW // hw_tile
    lane_acc = 128 if hw_tile % 128 == 0 else 1
    mean_c, var_c = pl.pallas_call(
        functools.partial(_bn_stats_kernel, inv_count=1.0 / (N * HW)),
        out_shape=(jax.ShapeDtypeStruct((C, 1), jnp.float32),
                   jax.ShapeDtypeStruct((C, 1), jnp.float32)),
        grid=(num_c, N, num_hw),
        in_specs=[pl.BlockSpec((None, c_tile, hw_tile),
                               lambda ci, ni, hi: (ni, ci, hi))],
        out_specs=(pl.BlockSpec((c_tile, 1), lambda ci, ni, hi: (ci, 0)),
                   pl.BlockSpec((c_tile, 1), lambda ci, ni, hi: (ci, 0))),
        scratch_shapes=[pltpu.VMEM((c_tile, lane_acc), jnp.float32),
                        pltpu.VMEM((c_tile, lane_acc), jnp.float32)],
        compiler_params=pltpu.CompilerParams(
            dimension_semantics=("parallel", "arbitrary", "arbitrary"),
            vmem_limit_bytes=vmem_limit),
    )(x3)
    return mean_c.reshape(C), var_c.reshape(C)


def _apply_affine(x3, mean, var, weight, bias, c_tile, hw_tile, vmem_limit,
                  eps, compute_dtype):
    N, C, HW = x3.shape
    num_c = C // c_tile
    num_hw = HW // hw_tile
    return pl.pallas_call(
        functools.partial(_bn_apply_kernel, eps=eps, compute_dtype=compute_dtype),
        out_shape=jax.ShapeDtypeStruct((N, C, HW), x3.dtype),
        grid=(N, num_c, num_hw),
        in_specs=[pl.BlockSpec((None, c_tile, hw_tile),
                               lambda ni, ci, hi: (ni, ci, hi)),
                  pl.BlockSpec((c_tile, 1), lambda ni, ci, hi: (ci, 0)),
                  pl.BlockSpec((c_tile, 1), lambda ni, ci, hi: (ci, 0)),
                  pl.BlockSpec((c_tile, 1), lambda ni, ci, hi: (ci, 0)),
                  pl.BlockSpec((c_tile, 1), lambda ni, ci, hi: (ci, 0))],
        out_specs=pl.BlockSpec((None, c_tile, hw_tile),
                               lambda ni, ci, hi: (ni, ci, hi)),
        compiler_params=pltpu.CompilerParams(
            dimension_semantics=("parallel", "parallel", "parallel"),
            vmem_limit_bytes=vmem_limit),
    )(x3,
      mean.reshape(C, 1).astype(jnp.float32),
      var.reshape(C, 1).astype(jnp.float32),
      weight.reshape(C, 1).astype(jnp.float32),
      bias.reshape(C, 1).astype(jnp.float32))


# ---------------------------------------------------------------------------
# Public wrappers (module state handled functionally).
# ---------------------------------------------------------------------------
def batchnorm2d_forward_train(x, weight, bias, running_mean, running_var,
                              num_batches_tracked, *, eps=1e-5, momentum=0.1,
                              fused=None):
    """Training-mode BatchNorm2d forward.  x: (N, C, H, W).

    Returns (y, new_running_mean, new_running_var, new_num_batches_tracked).
    """
    N, C, H, W = x.shape
    HW = H * W
    x3 = x.reshape(N, C, HW)  # free reshape, no transpose / HBM copy
    itemsize = jnp.dtype(x.dtype).itemsize
    compute_dtype = jnp.bfloat16 if x.dtype == jnp.bfloat16 else jnp.float32
    vmem_limit = _vmem_limit_bytes()

    c_tile_fused = _choose_fused_c_tile(N, C, HW, itemsize, vmem_limit)
    use_fused = (c_tile_fused is not None) if fused is None \
        else (bool(fused) and c_tile_fused is not None)

    if use_fused:
        y3, mean_c, var_c = _fused_train(x3, weight, bias, c_tile_fused,
                                         vmem_limit, eps, compute_dtype)
    else:
        c_tile, hw_tile = _choose_tiles(C, HW, itemsize)
        mean_c, var_c = _batch_stats(x3, c_tile, hw_tile, vmem_limit)
        y3 = _apply_affine(x3, mean_c, var_c, weight, bias, c_tile, hw_tile,
                           vmem_limit, eps, compute_dtype)

    y = y3.reshape(N, C, H, W)

    # Running-stat EMA.  This module's spec uses torch.var(unbiased=False), so
    # the *biased* variance feeds the EMA on purpose.
    new_running_mean = (1.0 - momentum) * running_mean + momentum * mean_c.astype(running_mean.dtype)
    new_running_var = (1.0 - momentum) * running_var + momentum * var_c.astype(running_var.dtype)
    new_num_batches_tracked = num_batches_tracked + 1
    return y, new_running_mean, new_running_var, new_num_batches_tracked


def batchnorm2d_forward_eval(x, weight, bias, running_mean, running_var, *, eps=1e-5):
    """Eval-mode BatchNorm2d forward: normalize with running stats (1 read + 1 write)."""
    N, C, H, W = x.shape
    HW = H * W
    x3 = x.reshape(N, C, HW)
    itemsize = jnp.dtype(x.dtype).itemsize
    compute_dtype = jnp.bfloat16 if x.dtype == jnp.bfloat16 else jnp.float32
    vmem_limit = _vmem_limit_bytes()
    c_tile, hw_tile = _choose_tiles(C, HW, itemsize)
    y3 = _apply_affine(x3, running_mean, running_var, weight, bias,
                       c_tile, hw_tile, vmem_limit, eps, compute_dtype)
    return y3.reshape(N, C, H, W)


# ---------------------------------------------------------------------------
# Pure-JAX references of the PyTorch module (for checking).
# ---------------------------------------------------------------------------
def _reference_forward_train(x, weight, bias, eps):
    mean = jnp.mean(x, axis=(0, 2, 3), keepdims=True)
    var = jnp.var(x, axis=(0, 2, 3), keepdims=True)  # biased
    x_normed = (x - mean) / jnp.sqrt(var + eps)
    return weight[None, :, None, None] * x_normed + bias[None, :, None, None]


def _reference_forward_eval(x, weight, bias, rm, rv, eps):
    x_normed = (x - rm[None, :, None, None]) / jnp.sqrt(rv[None, :, None, None] + eps)
    return weight[None, :, None, None] * x_normed + bias[None, :, None, None]


if __name__ == "__main__":
    key = jax.random.PRNGKey(0)
    N, C, H, W = 2, 4, 16, 16
    eps, momentum = 1e-5, 0.1

    k_x, k_w, k_b = jax.random.split(key, 3)
    x = jax.random.normal(k_x, (N, C, H, W), dtype=jnp.float32)

    # Module __init__: weight=ones, bias=zeros; perturb deterministically so the
    # affine path is actually exercised.
    weight = jnp.ones((C,), jnp.float32) + 0.1 * jax.random.normal(k_w, (C,), jnp.float32)
    bias = jnp.zeros((C,), jnp.float32) + 0.1 * jax.random.normal(k_b, (C,), jnp.float32)

    running_mean = jnp.zeros((C,), jnp.float32)
    running_var = jnp.ones((C,), jnp.float32)
    num_batches_tracked = jnp.array(0, jnp.int32)

    # Fused fast path (auto-selected for this size).
    y, rm, rv, nbt = batchnorm2d_forward_train(
        x, weight, bias, running_mean, running_var, num_batches_tracked,
        eps=eps, momentum=momentum)
    # Also exercise the two-phase tiled path explicitly.
    y2, rm2, rv2, _ = batchnorm2d_forward_train(
        x, weight, bias, running_mean, running_var, num_batches_tracked,
        eps=eps, momentum=momentum, fused=False)
    y_eval = batchnorm2d_forward_eval(x, weight, bias, rm, rv, eps=eps)
    jax.block_until_ready((y, rm, rv, nbt, y2, rm2, rv2, y_eval))

    # Correctness checks against pure-JAX references of the PyTorch module.
    y_ref = _reference_forward_train(x, weight, bias, eps)
    mean_ref = jnp.mean(x, axis=(0, 2, 3))
    var_ref = jnp.var(x, axis=(0, 2, 3))
    rm_ref = (1 - momentum) * running_mean + momentum * mean_ref
    rv_ref = (1 - momentum) * running_var + momentum * var_ref
    y_eval_ref = _reference_forward_eval(x, weight, bias, rm_ref, rv_ref, eps)

    assert y.shape == (N, C, H, W) and y.dtype == x.dtype
    assert jnp.allclose(y, y_ref, atol=1e-5, rtol=1e-5)
    assert jnp.allclose(y2, y_ref, atol=1e-5, rtol=1e-5)
    assert jnp.allclose(rm, rm_ref, atol=1e-5, rtol=1e-5)
    assert jnp.allclose(rv, rv_ref, atol=1e-5, rtol=1e-5)
    assert jnp.allclose(rm2, rm_ref, atol=1e-5, rtol=1e-5)
    assert jnp.allclose(rv2, rv_ref, atol=1e-5, rtol=1e-5)
    assert jnp.allclose(y_eval, y_eval_ref, atol=1e-5, rtol=1e-5)
    assert int(nbt) == 1

    print("KERNEL_OK")
</pallas_src>

<mosaic_0001>
module attributes {stable_mosaic.version = 11 : i64} {
  func.func @_bn_fused_kernel(%arg0: i32, %arg1: memref<2x4x256xf32, #tpu.memory_space<vmem>>, %arg2: memref<4x1xf32, #tpu.memory_space<vmem>>, %arg3: memref<4x1xf32, #tpu.memory_space<vmem>>, %arg4: memref<2x4x256xf32, #tpu.memory_space<vmem>>, %arg5: memref<4x1xf32, #tpu.memory_space<vmem>>, %arg6: memref<4x1xf32, #tpu.memory_space<vmem>>) attributes {dimension_semantics = [#tpu.dimension_semantics<parallel>], iteration_bounds = array<i64: 1>, scalar_prefetch = 0 : i64, scratch_operands = 0 : i64, tpu.core_type = #tpu.core_type<tc>, window_params = [{transform_indices = @transform_0, window_bounds = array<i64: 2, 4, 256>}, {transform_indices = @transform_1, window_bounds = array<i64: 4, 1>}, {transform_indices = @transform_2, window_bounds = array<i64: 4, 1>}, {transform_indices = @transform_3, window_bounds = array<i64: 2, 4, 256>}, {transform_indices = @transform_4, window_bounds = array<i64: 4, 1>}, {transform_indices = @transform_5, window_bounds = array<i64: 4, 1>}]} {
    %cst = arith.constant 0.000000e+00 : f32
    %0 = vector.broadcast %cst : f32 to vector<4x1xf32>
    %c0_i32 = arith.constant 0 : i32
    %c2_i32 = arith.constant 2 : i32
    %1 = arith.addi %c0_i32, %c2_i32 : i32
    %c1_i32 = arith.constant 1 : i32
    %2 = scf.for %arg7 = %c0_i32 to %1 step %c1_i32 iter_args(%arg8 = %0) -> (vector<4x1xf32>)  : i32 {
      %21 = arith.index_cast %arg7 : i32 to index
      %c0_20 = arith.constant 0 : index
      %c0_21 = arith.constant 0 : index
      %22 = vector.load %arg1[%21, %c0_20, %c0_21] : memref<2x4x256xf32, #tpu.memory_space<vmem>>, vector<1x4x256xf32>
      %23 = vector.shape_cast %22 : vector<1x4x256xf32> to vector<4x256xf32>
      %cst_22 = arith.constant dense<0.000000e+00> : vector<4xf32>
      %24 = vector.multi_reduction <add>, %23, %cst_22 [1] : vector<4x256xf32> to vector<4xf32>
      %25 = vector.shape_cast %24 : vector<4xf32> to vector<4x1xf32>
      %26 = arith.addf %arg8, %25 : vector<4x1xf32>
      scf.yield %26 : vector<4x1xf32>
    }
    %c2_i32_0 = arith.constant 2 : i32
    %cst_1 = arith.constant 0.001953125 : f32
    %3 = vector.broadcast %cst_1 : f32 to vector<4x1xf32>
    %4 = arith.mulf %2, %3 : vector<4x1xf32>
    %cst_2 = arith.constant 0.000000e+00 : f32
    %5 = vector.broadcast %cst_2 : f32 to vector<4x1xf32>
    %c0_i32_3 = arith.constant 0 : i32
    %c2_i32_4 = arith.constant 2 : i32
    %6 = arith.addi %c0_i32_3, %c2_i32_4 : i32
    %c1_i32_5 = arith.constant 1 : i32
    %7 = scf.for %arg7 = %c0_i32_3 to %6 step %c1_i32_5 iter_args(%arg8 = %5) -> (vector<4x1xf32>)  : i32 {
      %21 = arith.index_cast %arg7 : i32 to index
      %c0_20 = arith.constant 0 : index
      %c0_21 = arith.constant 0 : index
      %22 = vector.load %arg1[%21, %c0_20, %c0_21] : memref<2x4x256xf32, #tpu.memory_space<vmem>>, vector<1x4x256xf32>
      %23 = vector.shape_cast %22 : vector<1x4x256xf32> to vector<4x256xf32>
      %24 = vector.broadcast %4 : vector<4x1xf32> to vector<4x256xf32>
      %25 = arith.subf %23, %24 : vector<4x256xf32>
      %26 = arith.mulf %25, %25 : vector<4x256xf32>
      %cst_22 = arith.constant dense<0.000000e+00> : vector<4xf32>
      %27 = vector.multi_reduction <add>, %26, %cst_22 [1] : vector<4x256xf32> to vector<4xf32>
      %28 = vector.shape_cast %27 : vector<4xf32> to vector<4x1xf32>
      %29 = arith.addf %arg8, %28 : vector<4x1xf32>
      scf.yield %29 : vector<4x1xf32>
    }
    %c2_i32_6 = arith.constant 2 : i32
    %cst_7 = arith.constant 0.001953125 : f32
    %8 = vector.broadcast %cst_7 : f32 to vector<4x1xf32>
    %9 = arith.mulf %7, %8 : vector<4x1xf32>
    %c0 = arith.constant 0 : index
    %c0_8 = arith.constant 0 : index
    %10 = vector.load %arg5[%c0, %c0_8] : memref<4x1xf32, #tpu.memory_space<vmem>>, vector<4x1xf32>
    tpu.vector_store %arg5[%c0, %c0_8], %4 {strides = array<i32>} : memref<4x1xf32, #tpu.memory_space<vmem>>, vector<4x1xf32>,
    %c0_9 = arith.constant 0 : index
    %c0_10 = arith.constant 0 : index
    %11 = vector.load %arg6[%c0_9, %c0_10] : memref<4x1xf32, #tpu.memory_space<vmem>>, vector<4x1xf32>
    tpu.vector_store %arg6[%c0_9, %c0_10], %9 {strides = array<i32>} : memref<4x1xf32, #tpu.memory_space<vmem>>, vector<4x1xf32>,
    %cst_11 = arith.constant 9.99999974E-6 : f32
    %12 = vector.broadcast %cst_11 : f32 to vector<4x1xf32>
    %13 = arith.addf %9, %12 : vector<4x1xf32>
    %14 = math.rsqrt %13 : vector<4x1xf32>
    %c0_12 = arith.constant 0 : index
    %c0_13 = arith.constant 0 : index
    %15 = vector.load %arg2[%c0_12, %c0_13] : memref<4x1xf32, #tpu.memory_space<vmem>>, vector<4x1xf32>
    %16 = arith.mulf %15, %14 : vector<4x1xf32>
    %c0_14 = arith.constant 0 : index
    %c0_15 = arith.constant 0 : index
    %17 = vector.load %arg3[%c0_14, %c0_15] : memref<4x1xf32, #tpu.memory_space<vmem>>, vector<4x1xf32>
    %18 = arith.mulf %4, %16 : vector<4x1xf32>
    %19 = arith.subf %17, %18 : vector<4x1xf32>
    %c0_i32_16 = arith.constant 0 : i32
    %c2_i32_17 = arith.constant 2 : i32
    %20 = arith.addi %c0_i32_16, %c2_i32_17 : i32
    %c1_i32_18 = arith.constant 1 : i32
    scf.for %arg7 = %c0_i32_16 to %20 step %c1_i32_18  : i32 {
      %21 = arith.index_cast %arg7 : i32 to index
      %c0_20 = arith.constant 0 : index
      %c0_21 = arith.constant 0 : index
      %22 = vector.load %arg1[%21, %c0_20, %c0_21] : memref<2x4x256xf32, #tpu.memory_space<vmem>>, vector<1x4x256xf32>
      %23 = vector.shape_cast %22 : vector<1x4x256xf32> to vector<4x256xf32>
      %24 = vector.broadcast %16 : vector<4x1xf32> to vector<4x256xf32>
      %25 = arith.mulf %23, %24 : vector<4x256xf32>
      %26 = vector.broadcast %19 : vector<4x1xf32> to vector<4x256xf32>
      %27 = arith.addf %25, %26 : vector<4x256xf32>
      %28 = arith.index_cast %arg7 : i32 to index
      %c0_22 = arith.constant 0 : index
      %c0_23 = arith.constant 0 : index
      %29 = vector.load %arg4[%28, %c0_22, %c0_23] : memref<2x4x256xf32, #tpu.memory_space<vmem>>, vector<1x4x256xf32>
      %30 = vector.shape_cast %29 : vector<1x4x256xf32> to vector<4x256xf32>
      %31 = vector.shape_cast %27 : vector<4x256xf32> to vector<1x4x256xf32>
      tpu.vector_store %arg4[%28, %c0_22, %c0_23], %31 {strides = array<i32>} : memref<2x4x256xf32, #tpu.memory_space<vmem>>, vector<1x4x256xf32>,
    }
    %c2_i32_19 = arith.constant 2 : i32
    return
  }
  func.func @transform_0(%arg0: i32) -> (i32, i32, i32) {
    %c0_i32 = arith.constant 0 : i32
    %c0_i32_0 = arith.constant 0 : i32
    %c0_i32_1 = arith.constant 0 : i32
    return %c0_i32, %arg0, %c0_i32_0 : i32, i32, i32
  }
  func.func @transform_1(%arg0: i32) -> (i32, i32) {
    %c0_i32 = arith.constant 0 : i32
    %c0_i32_0 = arith.constant 0 : i32
    return %arg0, %c0_i32 : i32, i32
  }
  func.func @transform_2(%arg0: i32) -> (i32, i32) {
    %c0_i32 = arith.constant 0 : i32
    %c0_i32_0 = arith.constant 0 : i32
    return %arg0, %c0_i32 : i32, i32
  }
  func.func @transform_3(%arg0: i32) -> (i32, i32, i32) {
    %c0_i32 = arith.constant 0 : i32
    %c0_i32_0 = arith.constant 0 : i32
    %c0_i32_1 = arith.constant 0 : i32
    return %c0_i32, %arg0, %c0_i32_0 : i32, i32, i32
  }
  func.func @transform_4(%arg0: i32) -> (i32, i32) {
    %c0_i32 = arith.constant 0 : i32
    %c0_i32_0 = arith.constant 0 : i32
    return %arg0, %c0_i32 : i32, i32
  }
  func.func @transform_5(%arg0: i32) -> (i32, i32) {
    %c0_i32 = arith.constant 0 : i32
    %c0_i32_0 = arith.constant 0 : i32
    return %arg0, %c0_i32 : i32, i32
  }
}

</mosaic_0001>

<bundles_post_ra>
// kernel: tpu_custom_call.1
= control target key start
LH: loop header
LB: loop body
LE: loop exit
PB: predicated region body
PF: predicated region fallthrough
CT: control target
= control target key end

     0   :  { %11 = vsyncpa [#allocation3], 0  ;;  %s404_s0 = inlined_call_operand.hbm [shape: f32[2,4,256], index: 0, kind: input, shape index: {}]   ;;  %s405_s1 = inlined_call_operand.vmem [shape: f32[4,1], index: 1, kind: input, shape index: {}]   ;;  %s406_s2 = inlined_call_operand.vmem [shape: f32[4,1], index: 2, kind: input, shape index: {}]   ;;  %s407_s3 = inlined_call_operand.hbm [shape: f32[2,4,256], index: 3, kind: output, shape index: {0}]   ;;  %s408_s4 = inlined_call_operand.vmem [shape: f32[4,1], index: 4, kind: output, shape index: {1}]   ;;  %s409_s5 = inlined_call_operand.vmem [shape: f32[4,1], index: 5, kind: output, shape index: {2}]  }
   0x1   :  { %12 = vsyncpa [#allocation4], 0  ;;  %s335_s18 = smov [#allocation2]  }
   0x2   :  { %s18_s19 = sshll.u32 %s335_s18, 4  ;;  %s19_s19 = int_to_ptr.vmem [resolvable:$true] %s18_s19 }
   0x3   :  { %s259_s20 = scalar_lea.vmem %s19_s19, 256  ;;  %p264_p1 = scmp.lt.s32.totalorder %s19_s19, %s19_s19 }
   0x4   :  { %p260_p0 = scmp.ne.s32.totalorder %s19_s19, %s259_s20  ;;  %p265_p2 = scmp.lt.s32.totalorder %s259_s20, %s259_s20 }
   0x6   :  { %p266_p3 = por %p265_p2, %p264_p1 }
   0x8   :  { %p267_p4 = pnand %p266_p3, %p260_p0 }
   0xa   :  { %270 = shalt.err (!%p267_p4)
}
   0xb   :  { %s336_s21 = smov 128   ;;  %s337_s22 = smov 8  }
   0xc   :  { %24 = dma.hbm_to_vmem [thread:$0]  %s404_s0, 256, %s19_s19, [#allocation3], %s336_s21, %s336_s21, %s337_s22  }
   0xd   :  { %311 = dma.done.wait [#allocation3], 256  }
   0xe   :  { %312 = vsyncadd [#allocation3], 4294967040  ;;  %v315_v0 = vmov 0.0   ;;  %s319_s25 = smov 0  }
   0xf LB: > { %s197_s26 = sshll.u32 %s321_s25, 3  ;;  %vm46_vm0 = vcmask 1043456   ;;  %s37_s25 = sadd.s32 1, %s321_s25   ;;  %s321_s25 = sphi %s319_s25, %s37_s25   ;;  %v317_v0 = vphi %v315_v0, %v316_v0  }
  0x10   : > { %s41_s27 = scalar_lea.vmem [#allocation2], %s197_s26  ;;  %p34_p5 = scmp.ge.s32.totalorder %s37_s25, 2  }
  0x11   : > { %v42_v1 = vld [vmem:[%s41_s27] sm:$0xff]  ;;  %v323_v9 = vmov (%p34_p5), 0.0   ;;  %s379_s0 = smov (%p34_p5), 0  }
  0x12   : > { %v44_v2 = vcombine.high %v42_v1, %v42_v1  ;;  %v47_v3 = vsel %vm46_vm0, %v42_v1, 0.0 }
  0x14   : > { %v48_v4 = vsel %vm46_vm0, %v44_v2, 0.0 }
  0x15   : > { %v49_v5 = vadd.f32 %v48_v4, %v47_v3 }
  0x17   : > { %50 = vadd.xlane.f32.xlu0 %v49_v5 }
  0x9f   :  { %36 = sbr.rel (!%p34_p5) target bundleno = 15 (0xf), region = 77 }
  0xa0   : > { %v51_v6 = vpop.xlane.xlu0 %50 }
  0xa1   : > { %v52_v7 = vadd.f32 %v317_v0, %v51_v6  }
  0xa3   : > { %v316_v0 = vmov %v52_v7   ;;  %v53_v8 = vmul.f32 (%p34_p5), 0.001953125, %v52_v7 }
  0xa4 LB: > { %v69_v10 = vlaneseq  ;;  %v338_v11 = vmov 839922192   ;;  %s198_s28 = sshll.u32 %s329_s0, 3  ;;  %s59_s0 = sadd.s32 1, %s329_s0   ;;  %s329_s0 = sphi %s379_s0, %s59_s0   ;;  %v325_v9 = vphi %v323_v9, %v324_v9  }
  0xa5   : > { %v67_v12 = vunpack.c.l.s4 %v338_v11  ;;  %s63_s29 = scalar_lea.vmem [#allocation2], %s198_s28  ;;  %p56_p6 = scmp.ge.s32.totalorder %s59_s0, 2  }
  0xa6   : > { %v70_v13 = vshrl.u32 %v69_v10, 7  ;;  %v64_v16 = vld [vmem:[%s63_s29] sm:$0xff]  ;;  %vm87_vm1 = vcmask (%p56_p6), 3072   ;;  %s331_s13 = smov (%p56_p6), 0  }
  0xa7   : > { %v68_v14 = vunpack.c.0.s8 %v67_v12  ;;  %88 = vst.msk [vmem:[%s408_s4] sm:$0xf] (%p56_p6), %vm87_vm1, %v53_v8  ;;  %v92_v28 = vld [vmem:[%s405_s1] sm:$0xf] (%p56_p6) }
  0xa8   :  { %v94_v31 = vld [vmem:[%s406_s2] sm:$0xf] (%p56_p6) }
  0xa9   : > { %v71_v15 = vsub.s32 %v68_v14, %v70_v13 }
  0xab   : > { %v72_v17 = vrot.slane %v53_v8, %v71_v15 }
  0xad   : > { %v74_v18 = vsub.f32 %v64_v16, %v72_v17 }
  0xaf   : > { %v75_v19 = vmul.f32 %v74_v18, %v74_v18 }
  0xb1   : > { %v77_v20 = vcombine.high %v75_v19, %v75_v19  ;;  %v80_v21 = vsel %vm46_vm0, %v75_v19, 0.0 }
  0xb3   : > { %v81_v22 = vsel %vm46_vm0, %v77_v20, 0.0 }
  0xb4   : > { %v82_v23 = vadd.f32 %v81_v22, %v80_v21 }
  0xb6   : > { %83 = vadd.xlane.f32.xlu0 %v82_v23 }
 0x13e   :  { %58 = sbr.rel (!%p56_p6) target bundleno = 164 (0xa4), region = 88 }
 0x13f   : > { %v84_v24 = vpop.xlane.xlu0 %83 }
 0x140   : > { %v85_v25 = vadd.f32 %v325_v9, %v84_v24  }
 0x142   : > { %v324_v9 = vmov %v85_v25   ;;  %v86_v26 = vmul.f32 (%p56_p6), 0.001953125, %v85_v25 }
 0x144   :  { %89 = vst.msk [vmem:[%s409_s5] sm:$0xf] %vm87_vm1, %v86_v26  ;;  %v90_v27 = vadd.f32 1e-05, %v86_v26 }
 0x146   :  { %248 = vrsqrt.f32 %v90_v27 }
 0x153   :  { %v249_v29 = vpop.eup %248 }
 0x154   :  { %v93_v30 = vmul.f32 %v249_v29, %v92_v28 }
 0x156   :  { %v95_v32 = vmul.f32 %v93_v30, %v53_v8 }
 0x158   :  { %v96_v33 = vsub.f32 %v94_v31, %v95_v32 }
 0x159 LB: > { %v339_v34 = vmov 0   ;;  %s199_s4 = sshll.u32 %s333_s13, 3  ;;  %s102_s13 = sadd.s32 1, %s333_s13   ;;  %s333_s13 = sphi %s331_s13, %s102_s13  }
 0x15a   : > { %250 = vset.pattern.permute.xlu0 %v339_v34  ;;  %s105_s1 = scalar_lea.vmem [#allocation2], %s199_s4  ;;  %s134_s2 = scalar_lea.vmem [#allocation5], %s199_s4 }
 0x15b   : > { %109 = vperm.xlu0 %250, %v93_v30   ;;  %v106_v37 = vld [vmem:[%s105_s1] sm:$0xff]  ;;  %p99_p7 = scmp.ge.s32.totalorder %s102_s13, 2  }
 0x15c   :  { %s340_s5 = smov (%p99_p7), [#allocation5]  }
 0x15d   :  { %s141_s14 = sshll.u32 (%p99_p7), %s340_s5, 4  ;;  %s142_s14 = int_to_ptr.vmem [resolvable:$true] %s141_s14 }
 0x15e   :  { %s271_s15 = scalar_lea.vmem (%p99_p7), %s142_s14, 256  ;;  %p276_p9 = scmp.lt.s32.totalorder (%p99_p7), %s142_s14, %s142_s14 }
 0x15f   : > { %122 = vperm.xlu0 %250, %v96_v33   ;;  %p272_p8 = scmp.ne.s32.totalorder (%p99_p7), %s142_s14, %s271_s15  ;;  %p277_p10 = scmp.lt.s32.totalorder (%p99_p7), %s271_s15, %s271_s15 }
 0x161   :  { %p278_p11 = por (%p99_p7), %p277_p10, %p276_p9 }
 0x163   :  { %p279_p12 = pnand (%p99_p7), %p278_p11, %p272_p8 }
 0x1d6   : > { %v110_v35 = vpop.permute.xlu0 %109 }
 0x1d7   : > { %v117_v36 = vrot.slane %v110_v35, %v71_v15 }
 0x1d9   : > { %v119_v39 = vmul.f32 %v117_v36, %v106_v37 }
 0x1da   : > { %v123_v38 = vpop.permute.xlu0 %122 }
 0x1db   : > { %v130_v40 = vrot.slane %v123_v38, %v71_v15  ;;  %101 = sbr.rel (!%p99_p7) target bundleno = 345 (0x159), region = 99 }
 0x1dd   : > { %v132_v41 = vadd.f32 %v130_v40, %v119_v39 }
 0x1df   : > { %135 = vst [vmem:[%s134_s2] sm:$0xff] %v132_v41 }
 0x1e0   :  { %282 = shalt.err (!%p279_p12)
}
 0x1e1   :  { %147 = dma.vmem_to_hbm [thread:$0]  %s142_s14, 256, %s407_s3, [#allocation4], %s336_s21, %s336_s21, %s337_s22  }
 0x1e2   :  { %313 = dma.done.wait [#allocation4], 256  }
 0x1e3   :  { %314 = vsyncadd [#allocation4], 4294967040 }
 0x1e4   :  { %159 = vsyncpa [#allocation3], 1 }
 0x1e5   :  { %160 = vsyncpa [#allocation4], 1 }

</bundles_post_ra>
